<compile_context>
chip_gen: v6e
topology: v6e:2x2x1
jax: 0.10.0
libtpu: 0.0.40
codegen_flags: <defaults>
</compile_context>

<pallas_src>
import functools

import jax
import jax.numpy as jnp
from jax.experimental import pallas as pl
from jax.experimental.pallas import tpu as pltpu

MODULE_EPS = 1e-6   # CrossEntropySurvLoss.eps, used for log(risk + eps)
CE_EPS = 1e-7       # ce_loss default eps (called without eps kwarg)
COX_EPS = 1e-7      # pycox cox_ph_loss_sorted default eps
ALPHA = 0.15        # CrossEntropySurvLoss default alpha
NEG_BIG = -1e30     # finite pad for sorted, max-shifted log-risk: exp(NEG_BIG) == 0
LANES = 128         # lane width / triangular-tile size (works on v5e/v6e/v7x)
MAX_TB = 4096       # samples per grid step (RT = MAX_TB // 128 = 32 sublane rows)


def _surv_loss_kernel(rowpfx_ref, tri_ref, logh_ref, ev_ref,
                      gh_ref, gS_ref, gSp_ref, c_ref, m_ref,
                      num_ref, den_ref, ce_ref, *, alpha):
    f32 = jnp.float32

    # ---------------- Cox PH partial likelihood (lane-parallel prefix sum) ----------
    log_h = logh_ref[...]                 # (RT, 128) sorted log-risk, already max-shifted
    ev = ev_ref[...]                      # (RT, 128) matching events (pads = 0)
    shifted = jnp.exp(log_h)              # padded entries underflow to exactly 0

    # Inclusive cumsum along the 128 lanes via the fixed upper-triangular (128,128)
    # constant on the MXU.  hi is exactly bf16-representable, lo is the residual, so
    # the sum is f32-accurate even if the MXU lowers f32 matmul as a single bf16 pass.
    tri = tri_ref[...]
    hi = shifted.astype(jnp.bfloat16).astype(f32)
    lo = shifted - hi
    lane_csum = (jnp.dot(hi, tri, preferred_element_type=f32)
                 + jnp.dot(lo, tri, preferred_element_type=f32))     # (RT, 128)

    # Exclusive prefix of all earlier 128-sample rows (precomputed in the wrapper, so
    # there is no carried state and the grid axis can be "parallel").
    csum = lane_csum + rowpfx_ref[...]                                # (RT,1) broadcast
    log_cumsum = jnp.log(csum + COX_EPS)

    # NOTE: padded rows rely on NEG_BIG being a large *finite* negative so that
    # (log_h - log_cumsum) stays finite and ev == 0 masks it.  Do not use -inf.
    num_ref[...] = jnp.sum((log_h - log_cumsum) * ev, axis=0, keepdims=True)[None]
    den_ref[...] = jnp.sum(ev, axis=0, keepdims=True)[None]

    # ---------------- discrete-time CE survival loss (lane-dense) -------------------
    c = c_ref[...]                        # (RT, 128) censoring indicator (pads = 0)
    one_minus_c = 1.0 - c
    g_h = gh_ref[...]                     # hazards[b, Y[b]]
    g_S = gS_ref[...]                     # S[b, Y[b]]
    g_Sp = gSp_ref[...]                   # S_padded[b, Y[b]]  (== 1 when Y == 0)

    reg = -one_minus_c * (jnp.log(g_Sp + CE_EPS)
                          + jnp.log(jnp.maximum(g_h, CE_EPS)))
    g_Sc = jnp.maximum(g_S, CE_EPS)
    ce_l = -c * jnp.log(g_Sc) - one_minus_c * jnp.log(1.0 - g_Sc)
    per = ((1.0 - alpha) * ce_l + alpha * reg) * m_ref[...]           # pads masked out
    ce_ref[...] = jnp.sum(per, axis=0, keepdims=True)[None]


def _round_up(x, m):
    return (x + m - 1) // m * m


def cross_entropy_surv_loss(risk, hazards, surv, label, c, duration, event,
                            alpha=ALPHA, eps=MODULE_EPS):
    """Forward pass of CrossEntropySurvLoss.  Returns a scalar f32 loss."""
    f32 = jnp.float32
    B, K = hazards.shape

    # ---- Cox glue (plain XLA, O(B log B)): log-risk, sort by duration descending,
    # max-shift.  gamma cancels in the Cox term, so it is folded into the input.
    log_h = jnp.log(risk.reshape(-1).astype(f32) + eps)
    order = jnp.argsort(-duration.reshape(-1))
    log_h_s = log_h[order] - jnp.max(log_h)
    ev_s = event.reshape(-1).astype(f32)[order]

    # ---- CE glue: lane-dense one-hot K-gathers done once in the wrapper.
    Y = label.reshape(B, 1).astype(jnp.int32)
    hz = hazards.astype(f32)
    S = surv.astype(f32)
    S_pad = jnp.concatenate([jnp.ones((B, 1), f32), S], axis=1)
    g_h = jnp.take_along_axis(hz, Y, axis=1)[:, 0]
    g_S = jnp.take_along_axis(S, Y, axis=1)[:, 0]
    g_Sp = jnp.take_along_axis(S_pad, Y, axis=1)[:, 0]
    cc = c.reshape(-1).astype(f32)

    # ---- tiling: batch padded to a multiple of 128 lanes; up to MAX_TB rows/step.
    b128 = _round_up(B, LANES)
    TB = min(b128, MAX_TB)
    B_pad = _round_up(B, TB)
    N = B_pad // TB
    RT = TB // LANES
    pad = B_pad - B
    n_rows = B_pad // LANES

    def tiles(x, pad_value=0.0):
        return jnp.pad(x, (0, pad), constant_values=pad_value).reshape(n_rows, LANES)

    log_h_p = tiles(log_h_s, NEG_BIG)
    ev_p = tiles(ev_s)
    gh_p = tiles(g_h, 0.5)
    gS_p = tiles(g_S, 0.5)
    gSp_p = tiles(g_Sp, 0.5)
    c_p = tiles(cc)
    msk_p = tiles(jnp.ones((B,), f32))

    # Exclusive prefix (over 128-sample rows) of sum(exp(log_h - gamma)); this breaks
    # the sequential carry so every grid step is independent ("parallel" grid axis).
    row_sums = jnp.sum(jnp.exp(log_h_p), axis=1)                     # (n_rows,)
    row_pfx = (jnp.cumsum(row_sums) - row_sums).reshape(n_rows, 1)   # exclusive

    # Fixed (128,128) inclusive-cumsum matrix: tri[j, l] = 1 iff j <= l (64 KiB).
    tri = jnp.triu(jnp.ones((LANES, LANES), f32))

    kernel = functools.partial(_surv_loss_kernel, alpha=float(alpha))
    row_spec = pl.BlockSpec((RT, LANES), lambda i: (i, 0))
    out_spec = pl.BlockSpec((1, 1, LANES), lambda i: (i, 0, 0))

    num_p, den_p, ce_p = pl.pallas_call(
        kernel,
        out_shape=(jax.ShapeDtypeStruct((N, 1, LANES), f32),   # Cox numerator partials
                   jax.ShapeDtypeStruct((N, 1, LANES), f32),   # Cox denominator partials
                   jax.ShapeDtypeStruct((N, 1, LANES), f32)),  # CE sum partials
        grid=(N,),
        in_specs=[
            pl.BlockSpec((RT, 1), lambda i: (i, 0)),           # row-level exclusive prefix
            pl.BlockSpec((LANES, LANES), lambda i: (0, 0)),    # tri constant
            row_spec,   # sorted, max-shifted log-risk
            row_spec,   # sorted events
            row_spec,   # hazards gathered at label
            row_spec,   # surv gathered at label
            row_spec,   # padded-surv gathered at label
            row_spec,   # censoring indicator
            row_spec,   # validity mask
        ],
        out_specs=(out_spec, out_spec, out_spec),
        compiler_params=pltpu.CompilerParams(
            dimension_semantics=("parallel",),
            vmem_limit_bytes=32 * 1024 * 1024),
    )(row_pfx, tri, log_h_p, ev_p, gh_p, gS_p, gSp_p, c_p, msk_p)

    cox = -(jnp.sum(num_p) / jnp.sum(den_p))
    return cox + jnp.sum(ce_p) / B


def _reference(risk, hazards, surv, label, c, duration, event,
               alpha=ALPHA, eps=MODULE_EPS):
    """Pure-JAX reference mirroring the PyTorch semantics."""
    B = hazards.shape[0]
    log_h = jnp.log(risk.reshape(-1).astype(jnp.float32) + eps)
    order = jnp.argsort(-duration.reshape(-1))
    lh = log_h[order]
    ev = event.reshape(-1).astype(jnp.float32)[order]
    gamma = lh.max()
    lcs = jnp.log(jnp.cumsum(jnp.exp(lh - gamma)) + COX_EPS) + gamma
    cox = -jnp.sum((lh - lcs) * ev) / jnp.sum(ev)

    Y = label.reshape(B, 1)
    cc = c.reshape(B, 1).astype(jnp.float32)
    S = surv.astype(jnp.float32)
    Sp = jnp.concatenate([jnp.ones_like(cc), S], axis=1)
    take = lambda a, idx: jnp.take_along_axis(a, idx, axis=1)
    reg = -(1 - cc) * (jnp.log(take(Sp, Y) + CE_EPS)
                       + jnp.log(jnp.maximum(take(hazards.astype(jnp.float32), Y), CE_EPS)))
    gS = jnp.maximum(take(S, Y), CE_EPS)
    ce_l = -cc * jnp.log(gS) - (1 - cc) * jnp.log(1 - gS)
    ce = ((1 - alpha) * ce_l + alpha * reg).mean()
    return cox + ce


if __name__ == "__main__":
    B, K = 8, 4
    key = jax.random.PRNGKey(0)
    k1, k2, k3, k4, k5, k6 = jax.random.split(key, 6)

    logits = jax.random.normal(k1, (B, K), dtype=jnp.float32)
    hazards = jax.nn.sigmoid(logits)                                 # outputs.hazards
    surv = jnp.cumprod(1.0 - hazards, axis=1)                        # outputs.surv
    risk = jax.random.uniform(k2, (B, 1), minval=0.01, maxval=1.0)   # outputs.risk
    duration = jax.random.uniform(k3, (B,), minval=0.0, maxval=10.0)
    event = (jax.random.uniform(k4, (B,)) > 0.3).astype(jnp.float32)
    event = event.at[0].set(1.0)                                     # ensure >= 1 event
    label = jax.random.randint(k5, (B,), 0, K)
    c = (jax.random.uniform(k6, (B,)) > 0.5).astype(jnp.float32)

    loss = cross_entropy_surv_loss(risk, hazards, surv, label, c, duration, event)
    loss = jax.block_until_ready(loss)

    ref = jax.block_until_ready(
        _reference(risk, hazards, surv, label, c, duration, event))
    assert jnp.allclose(loss, ref, rtol=2e-3, atol=1e-5), (loss, ref)

    print("KERNEL_OK")
</pallas_src>

<mosaic_0001>
module attributes {stable_mosaic.version = 11 : i64} {
  func.func @_surv_loss_kernel(%arg0: i32, %arg1: memref<1x1xf32, #tpu.memory_space<vmem>>, %arg2: memref<128x128xf32, #tpu.memory_space<vmem>>, %arg3: memref<1x128xf32, #tpu.memory_space<vmem>>, %arg4: memref<1x128xf32, #tpu.memory_space<vmem>>, %arg5: memref<1x128xf32, #tpu.memory_space<vmem>>, %arg6: memref<1x128xf32, #tpu.memory_space<vmem>>, %arg7: memref<1x128xf32, #tpu.memory_space<vmem>>, %arg8: memref<1x128xf32, #tpu.memory_space<vmem>>, %arg9: memref<1x128xf32, #tpu.memory_space<vmem>>, %arg10: memref<1x1x128xf32, #tpu.memory_space<vmem>>, %arg11: memref<1x1x128xf32, #tpu.memory_space<vmem>>, %arg12: memref<1x1x128xf32, #tpu.memory_space<vmem>>) attributes {dimension_semantics = [#tpu.dimension_semantics<parallel>], iteration_bounds = array<i64: 1>, scalar_prefetch = 0 : i64, scratch_operands = 0 : i64, tpu.core_type = #tpu.core_type<tc>, window_params = [{transform_indices = @transform_0, window_bounds = array<i64: 1, 1>}, {pipeline_mode = #tpu.pipeline_mode<synchronous>, transform_indices = @transform_1, window_bounds = array<i64: 128, 128>}, {transform_indices = @transform_2, window_bounds = array<i64: 1, 128>}, {transform_indices = @transform_3, window_bounds = array<i64: 1, 128>}, {transform_indices = @transform_4, window_bounds = array<i64: 1, 128>}, {transform_indices = @transform_5, window_bounds = array<i64: 1, 128>}, {transform_indices = @transform_6, window_bounds = array<i64: 1, 128>}, {transform_indices = @transform_7, window_bounds = array<i64: 1, 128>}, {transform_indices = @transform_8, window_bounds = array<i64: 1, 128>}, {transform_indices = @transform_9, window_bounds = array<i64: 1, 1, 128>}, {transform_indices = @transform_10, window_bounds = array<i64: 1, 1, 128>}, {transform_indices = @transform_11, window_bounds = array<i64: 1, 1, 128>}]} {
    %c0 = arith.constant 0 : index
    %c0_0 = arith.constant 0 : index
    %0 = vector.load %arg3[%c0, %c0_0] : memref<1x128xf32, #tpu.memory_space<vmem>>, vector<1x128xf32>
    %c0_1 = arith.constant 0 : index
    %c0_2 = arith.constant 0 : index
    %1 = vector.load %arg4[%c0_1, %c0_2] : memref<1x128xf32, #tpu.memory_space<vmem>>, vector<1x128xf32>
    %2 = math.exp %0 : vector<1x128xf32>
    %c0_3 = arith.constant 0 : index
    %c0_4 = arith.constant 0 : index
    %3 = vector.load %arg2[%c0_3, %c0_4] : memref<128x128xf32, #tpu.memory_space<vmem>>, vector<128x128xf32>
    %4 = arith.truncf %2 : vector<1x128xf32> to vector<1x128xbf16>
    %5 = arith.extf %4 : vector<1x128xbf16> to vector<1x128xf32>
    %6 = arith.subf %2, %5 : vector<1x128xf32>
    %cst = arith.constant dense<0.000000e+00> : vector<1x128xf32>
    %7 = tpu.matmul %5, %3, %cst {dimension_numbers = #tpu.dot_dimension_numbers<[1], [0], [0], [1], [0, 0, 1, 1], [], []>} : vector<1x128xf32>, vector<128x128xf32>, vector<1x128xf32> -> vector<1x128xf32>
    %cst_5 = arith.constant dense<0.000000e+00> : vector<1x128xf32>
    %8 = tpu.matmul %6, %3, %cst_5 {dimension_numbers = #tpu.dot_dimension_numbers<[1], [0], [0], [1], [0, 0, 1, 1], [], []>} : vector<1x128xf32>, vector<128x128xf32>, vector<1x128xf32> -> vector<1x128xf32>
    %9 = arith.addf %7, %8 : vector<1x128xf32>
    %c0_6 = arith.constant 0 : index
    %c0_7 = arith.constant 0 : index
    %10 = vector.load %arg1[%c0_6, %c0_7] : memref<1x1xf32, #tpu.memory_space<vmem>>, vector<1x1xf32>
    %11 = vector.broadcast %10 : vector<1x1xf32> to vector<1x128xf32>
    %12 = arith.addf %9, %11 : vector<1x128xf32>
    %cst_8 = arith.constant 1.000000e-07 : f32
    %13 = vector.broadcast %cst_8 : f32 to vector<1x128xf32>
    %14 = arith.addf %12, %13 : vector<1x128xf32>
    %15 = math.log %14 : vector<1x128xf32>
    %16 = arith.subf %0, %15 : vector<1x128xf32>
    %17 = arith.mulf %16, %1 : vector<1x128xf32>
    %cst_9 = arith.constant dense<0.000000e+00> : vector<128xf32>
    %18 = vector.multi_reduction <add>, %17, %cst_9 [0] : vector<1x128xf32> to vector<128xf32>
    %19 = vector.shape_cast %18 : vector<128xf32> to vector<1x128xf32>
    %20 = vector.shape_cast %19 : vector<1x128xf32> to vector<1x1x128xf32>
    %c0_10 = arith.constant 0 : index
    %c0_11 = arith.constant 0 : index
    %c0_12 = arith.constant 0 : index
    %21 = vector.load %arg10[%c0_10, %c0_11, %c0_12] : memref<1x1x128xf32, #tpu.memory_space<vmem>>, vector<1x1x128xf32>
    tpu.vector_store %arg10[%c0_10, %c0_11, %c0_12], %20 {strides = array<i32>} : memref<1x1x128xf32, #tpu.memory_space<vmem>>, vector<1x1x128xf32>,
    %cst_13 = arith.constant dense<0.000000e+00> : vector<128xf32>
    %22 = vector.multi_reduction <add>, %1, %cst_13 [0] : vector<1x128xf32> to vector<128xf32>
    %23 = vector.shape_cast %22 : vector<128xf32> to vector<1x128xf32>
    %24 = vector.shape_cast %23 : vector<1x128xf32> to vector<1x1x128xf32>
    %c0_14 = arith.constant 0 : index
    %c0_15 = arith.constant 0 : index
    %c0_16 = arith.constant 0 : index
    %25 = vector.load %arg11[%c0_14, %c0_15, %c0_16] : memref<1x1x128xf32, #tpu.memory_space<vmem>>, vector<1x1x128xf32>
    tpu.vector_store %arg11[%c0_14, %c0_15, %c0_16], %24 {strides = array<i32>} : memref<1x1x128xf32, #tpu.memory_space<vmem>>, vector<1x1x128xf32>,
    %c0_17 = arith.constant 0 : index
    %c0_18 = arith.constant 0 : index
    %26 = vector.load %arg8[%c0_17, %c0_18] : memref<1x128xf32, #tpu.memory_space<vmem>>, vector<1x128xf32>
    %cst_19 = arith.constant 1.000000e+00 : f32
    %27 = vector.broadcast %cst_19 : f32 to vector<1x128xf32>
    %28 = arith.subf %27, %26 : vector<1x128xf32>
    %c0_20 = arith.constant 0 : index
    %c0_21 = arith.constant 0 : index
    %29 = vector.load %arg5[%c0_20, %c0_21] : memref<1x128xf32, #tpu.memory_space<vmem>>, vector<1x128xf32>
    %c0_22 = arith.constant 0 : index
    %c0_23 = arith.constant 0 : index
    %30 = vector.load %arg6[%c0_22, %c0_23] : memref<1x128xf32, #tpu.memory_space<vmem>>, vector<1x128xf32>
    %c0_24 = arith.constant 0 : index
    %c0_25 = arith.constant 0 : index
    %31 = vector.load %arg7[%c0_24, %c0_25] : memref<1x128xf32, #tpu.memory_space<vmem>>, vector<1x128xf32>
    %cst_26 = arith.constant 0.000000e+00 : f32
    %32 = vector.broadcast %cst_26 : f32 to vector<1x128xf32>
    %33 = arith.subf %32, %28 : vector<1x128xf32>
    %cst_27 = arith.constant 1.000000e-07 : f32
    %34 = vector.broadcast %cst_27 : f32 to vector<1x128xf32>
    %35 = arith.addf %31, %34 : vector<1x128xf32>
    %36 = math.log %35 : vector<1x128xf32>
    %cst_28 = arith.constant 1.000000e-07 : f32
    %37 = vector.broadcast %cst_28 : f32 to vector<1x128xf32>
    %38 = arith.maximumf %29, %37 : vector<1x128xf32>
    %39 = math.log %38 : vector<1x128xf32>
    %40 = arith.addf %36, %39 : vector<1x128xf32>
    %41 = arith.mulf %33, %40 : vector<1x128xf32>
    %cst_29 = arith.constant 1.000000e-07 : f32
    %42 = vector.broadcast %cst_29 : f32 to vector<1x128xf32>
    %43 = arith.maximumf %30, %42 : vector<1x128xf32>
    %cst_30 = arith.constant 0.000000e+00 : f32
    %44 = vector.broadcast %cst_30 : f32 to vector<1x128xf32>
    %45 = arith.subf %44, %26 : vector<1x128xf32>
    %46 = math.log %43 : vector<1x128xf32>
    %47 = arith.mulf %45, %46 : vector<1x128xf32>
    %cst_31 = arith.constant 1.000000e+00 : f32
    %48 = vector.broadcast %cst_31 : f32 to vector<1x128xf32>
    %49 = arith.subf %48, %43 : vector<1x128xf32>
    %50 = math.log %49 : vector<1x128xf32>
    %51 = arith.mulf %28, %50 : vector<1x128xf32>
    %52 = arith.subf %47, %51 : vector<1x128xf32>
    %cst_32 = arith.constant 8.500000e-01 : f32
    %53 = vector.broadcast %cst_32 : f32 to vector<1x128xf32>
    %54 = arith.mulf %53, %52 : vector<1x128xf32>
    %cst_33 = arith.constant 1.500000e-01 : f32
    %55 = vector.broadcast %cst_33 : f32 to vector<1x128xf32>
    %56 = arith.mulf %55, %41 : vector<1x128xf32>
    %57 = arith.addf %54, %56 : vector<1x128xf32>
    %c0_34 = arith.constant 0 : index
    %c0_35 = arith.constant 0 : index
    %58 = vector.load %arg9[%c0_34, %c0_35] : memref<1x128xf32, #tpu.memory_space<vmem>>, vector<1x128xf32>
    %59 = arith.mulf %57, %58 : vector<1x128xf32>
    %cst_36 = arith.constant dense<0.000000e+00> : vector<128xf32>
    %60 = vector.multi_reduction <add>, %59, %cst_36 [0] : vector<1x128xf32> to vector<128xf32>
    %61 = vector.shape_cast %60 : vector<128xf32> to vector<1x128xf32>
    %62 = vector.shape_cast %61 : vector<1x128xf32> to vector<1x1x128xf32>
    %c0_37 = arith.constant 0 : index
    %c0_38 = arith.constant 0 : index
    %c0_39 = arith.constant 0 : index
    %63 = vector.load %arg12[%c0_37, %c0_38, %c0_39] : memref<1x1x128xf32, #tpu.memory_space<vmem>>, vector<1x1x128xf32>
    tpu.vector_store %arg12[%c0_37, %c0_38, %c0_39], %62 {strides = array<i32>} : memref<1x1x128xf32, #tpu.memory_space<vmem>>, vector<1x1x128xf32>,
    return
  }
  func.func @transform_0(%arg0: i32) -> (i32, i32) {
    %c0_i32 = arith.constant 0 : i32
    %c0_i32_0 = arith.constant 0 : i32
    return %arg0, %c0_i32 : i32, i32
  }
  func.func @transform_1(%arg0: i32) -> (i32, i32) {
    %c0_i32 = arith.constant 0 : i32
    %c0_i32_0 = arith.constant 0 : i32
    %c0_i32_1 = arith.constant 0 : i32
    return %c0_i32, %c0_i32_0 : i32, i32
  }
  func.func @transform_2(%arg0: i32) -> (i32, i32) {
    %c0_i32 = arith.constant 0 : i32
    %c0_i32_0 = arith.constant 0 : i32
    return %arg0, %c0_i32 : i32, i32
  }
  func.func @transform_3(%arg0: i32) -> (i32, i32) {
    %c0_i32 = arith.constant 0 : i32
    %c0_i32_0 = arith.constant 0 : i32
    return %arg0, %c0_i32 : i32, i32
  }
  func.func @transform_4(%arg0: i32) -> (i32, i32) {
    %c0_i32 = arith.constant 0 : i32
    %c0_i32_0 = arith.constant 0 : i32
    return %arg0, %c0_i32 : i32, i32
  }
  func.func @transform_5(%arg0: i32) -> (i32, i32) {
    %c0_i32 = arith.constant 0 : i32
    %c0_i32_0 = arith.constant 0 : i32
    return %arg0, %c0_i32 : i32, i32
  }
  func.func @transform_6(%arg0: i32) -> (i32, i32) {
    %c0_i32 = arith.constant 0 : i32
    %c0_i32_0 = arith.constant 0 : i32
    return %arg0, %c0_i32 : i32, i32
  }
  func.func @transform_7(%arg0: i32) -> (i32, i32) {
    %c0_i32 = arith.constant 0 : i32
    %c0_i32_0 = arith.constant 0 : i32
    return %arg0, %c0_i32 : i32, i32
  }
  func.func @transform_8(%arg0: i32) -> (i32, i32) {
    %c0_i32 = arith.constant 0 : i32
    %c0_i32_0 = arith.constant 0 : i32
    return %arg0, %c0_i32 : i32, i32
  }
  func.func @transform_9(%arg0: i32) -> (i32, i32, i32) {
    %c0_i32 = arith.constant 0 : i32
    %c0_i32_0 = arith.constant 0 : i32
    %c0_i32_1 = arith.constant 0 : i32
    return %arg0, %c0_i32, %c0_i32_0 : i32, i32, i32
  }
  func.func @transform_10(%arg0: i32) -> (i32, i32, i32) {
    %c0_i32 = arith.constant 0 : i32
    %c0_i32_0 = arith.constant 0 : i32
    %c0_i32_1 = arith.constant 0 : i32
    return %arg0, %c0_i32, %c0_i32_0 : i32, i32, i32
  }
  func.func @transform_11(%arg0: i32) -> (i32, i32, i32) {
    %c0_i32 = arith.constant 0 : i32
    %c0_i32_0 = arith.constant 0 : i32
    %c0_i32_1 = arith.constant 0 : i32
    return %arg0, %c0_i32, %c0_i32_0 : i32, i32, i32
  }
}

</mosaic_0001>

<bundles_post_ra>
// kernel: tpu_custom_call.1
= control target key start
LH: loop header
LB: loop body
LE: loop exit
PB: predicated region body
PF: predicated region fallthrough
CT: control target
= control target key end

     0   :  { %s664_s0 = inlined_call_operand.<no memory space> [shape: f32[1,1], index: 0, kind: input, shape index: {}]   ;;  %s665_s1 = inlined_call_operand.hbm [shape: f32[128,128], index: 1, kind: input, shape index: {}]   ;;  %s666_s2 = inlined_call_operand.vmem [shape: f32[1,128], index: 2, kind: input, shape index: {}]   ;;  %s667_s3 = inlined_call_operand.vmem [shape: f32[1,128], index: 3, kind: input, shape index: {}]   ;;  %s668_s4 = inlined_call_operand.vmem [shape: f32[1,128], index: 4, kind: input, shape index: {}]   ;;  %s669_s5 = inlined_call_operand.vmem [shape: f32[1,128], index: 5, kind: input, shape index: {}]   ;;  %s670_s6 = inlined_call_operand.vmem [shape: f32[1,128], index: 6, kind: input, shape index: {}]   ;;  %s671_s7 = inlined_call_operand.vmem [shape: f32[1,128], index: 7, kind: input, shape index: {}]   ;;  %s672_s8 = inlined_call_operand.vmem [shape: f32[1,128], index: 8, kind: input, shape index: {}]   ;;  %s673_s9 = inlined_call_operand.hbm [shape: f32[1,1,128], index: 9, kind: output, shape index: {0}]   ;;  %s674_s10 = inlined_call_operand.hbm [shape: f32[1,1,128], index: 10, kind: output, shape index: {1}]   ;;  %s675_s11 = inlined_call_operand.hbm [shape: f32[1,1,128], index: 11, kind: output, shape index: {2}]  }
   0x1   :  { %v17_v0 = vstv %s664_s0 }
   0x2   :  { %18 = vst [vmem:[#allocation2] sm:$0x1] %v17_v0 }
   0x3   :  { %19 = vsyncpa [#allocation4], 0 }
   0x4   :  { %20 = vsyncpa [#allocation5], 0 }
   0x5   :  { %21 = vsyncpa [#allocation8], 0  ;;  %s521_s19 = smov [#allocation3]  }
   0x6   :  { %s29_s20 = sshll.u32 %s521_s19, 4  ;;  %s30_s20 = int_to_ptr.vmem [resolvable:$true] %s29_s20 }
   0x7   :  { %s443_s21 = scalar_lea.vmem %s30_s20, 2048  ;;  %p448_p1 = scmp.lt.s32.totalorder %s30_s20, %s30_s20 }
   0x8   :  { %p444_p0 = scmp.ne.s32.totalorder %s30_s20, %s443_s21  ;;  %p449_p2 = scmp.lt.s32.totalorder %s443_s21, %s443_s21 }
   0xa   :  { %p450_p3 = por %p449_p2, %p448_p1 }
   0xc   :  { %p451_p4 = pnand %p450_p3, %p444_p0 }
   0xe   :  { %454 = shalt.err (!%p451_p4)
}
   0xf   :  { %s522_s22 = smov 128   ;;  %s523_s23 = smov 8  }
  0x10   :  { %35 = dma.hbm_to_vmem [thread:$0]  %s665_s1, 2048, %s30_s20, [#allocation4], %s522_s22, %s522_s22, %s523_s23  }
  0x11   :  { %515 = dma.done.wait [#allocation4], 2048  }
  0x12   :  { %516 = vsyncadd [#allocation4], 4294965248  ;;  %v524_v1 = vmov 0.0   ;;  %vm525_vm0 = vmmov 0   ;;  %v526_v2 = vmov 0   ;;  %v72_v3 = vld [vmem:[#allocation3 + $0x78] sm:$0xff] }
  0x13   :  { %343 = vmatprep.subr.mxu0 %v524_v1  ;;  %378 = vmatprep.subr.mxu1 %v524_v1  ;;  %v71_v4 = vld [vmem:[#allocation3 + $0x70] sm:$0xff]  ;;  %v70_v5 = vld [vmem:[#allocation3 + $0x68] sm:$0xff]  ;;  %v69_v6 = vld [vmem:[#allocation3 + $0x60] sm:$0xff] }
  0x14   :  { %375 = vmatprep.mubr.msk.f32.mxu0 %vm525_vm0, %v524_v1  ;;  %410 = vmatprep.mubr.msk.f32.mxu1 %vm525_vm0, %v524_v1  ;;  %v607_v7 = vld [vmem:[%s666_s2] sm:$0x1]  ;;  %v67_v10 = vld [vmem:[#allocation3 + $0x50] sm:$0xff]  ;;  %v66_v11 = vld [vmem:[#allocation3 + $0x48] sm:$0xff] }
  0x15   :  { %422 = vset.pattern.permute.xlu0 %v526_v2  ;;  %344 = vmatpush3.msra.mxu0 %v72_v3  ;;  %v68_v8 = vld [vmem:[#allocation3 + $0x58] sm:$0xff]  ;;  %v55_v9 = vmul.f32 1.442695, %v607_v7  ;;  %v65_v12 = vld [vmem:[#allocation3 + $0x40] sm:$0xff]  ;;  %v63_v14 = vld [vmem:[#allocation3 + $0x30] sm:$0xff] }
  0x16   :  { %379 = vmatpush3.msra.mxu1 %v72_v3  ;;  %345 = vmatprep.subr.mxu0 %v524_v1  ;;  %v64_v13 = vld [vmem:[#allocation3 + $0x38] sm:$0xff]  ;;  %v62_v15 = vld [vmem:[#allocation3 + $0x28] sm:$0xff]  ;;  %v61_v16 = vld [vmem:[#allocation3 + $0x20] sm:$0xff] }
  0x17   :  { %380 = vmatprep.subr.mxu1 %v524_v1  ;;  %346 = vmatpush3.msra.mxu0 %v71_v4  ;;  %423 = vpow2.f32 %v55_v9  ;;  %v60_v18 = vld [vmem:[#allocation3 + $0x18] sm:$0xff]  ;;  %v59_v20 = vld [vmem:[#allocation3 + $0x10] sm:$0xff]  ;;  %v58_v22 = vld [vmem:[#allocation3 + $0x8] sm:$0xff] }
  0x18   :  { %381 = vmatpush3.msra.mxu1 %v71_v4  ;;  %347 = vmatprep.subr.mxu0 %v524_v1  ;;  %v57_v23 = vld [vmem:[#allocation3] sm:$0xff]  ;;  %v216_v25 = vld [vmem:[#allocation2] sm:$0x1] }
  0x19   :  { %382 = vmatprep.subr.mxu1 %v524_v1  ;;  %348 = vmatpush3.msra.mxu0 %v70_v5  ;;  %v239_v26 = vld [vmem:[%s669_s5] sm:$0x1] }
  0x1a   :  { %383 = vmatpush3.msra.mxu1 %v70_v5  ;;  %349 = vmatprep.subr.mxu0 %v524_v1  ;;  %v250_v27 = vmax.f32 %v239_v26, 1e-07  ;;  %v238_v28 = vld [vmem:[%s668_s4] sm:$0x1] }
  0x1b   :  { %384 = vmatprep.subr.mxu1 %v524_v1  ;;  %350 = vmatpush3.msra.mxu0 %v69_v6  ;;  %v240_v29 = vld [vmem:[%s670_s6] sm:$0x1]  ;;  %v245_v31 = vmax.f32 %v238_v28, 1e-07  ;;  %s527_s6 = smov [#allocation7]  }
  0x1c   :  { %385 = vmatpush3.msra.mxu1 %v69_v6  ;;  %351 = vmatprep.subr.mxu0 %v524_v1  ;;  %v242_v30 = vadd.f32 1e-07, %v240_v29  ;;  %v255_v32 = vsub.f32 1.0, %v250_v27  ;;  %v236_v34 = vld [vmem:[%s671_s7] sm:$0x1]  ;;  %s283_s7 = sshll.u32 %s527_s6, 4  ;;  %s284_s7 = int_to_ptr.vmem [resolvable:$true] %s283_s7 }
  0x1d   :  { %386 = vmatprep.subr.mxu1 %v524_v1  ;;  %352 = vmatpush3.msra.mxu0 %v68_v8  ;;  %v237_v36 = vsub.f32 1.0, %v236_v34  ;;  %v251_v38 = vsub.f32 0.0, %v236_v34  ;;  %v54_v49 = vld [vmem:[%s667_s3] sm:$0x1]  ;;  %s455_s14 = scalar_lea.vmem %s284_s7, 16  ;;  %s459_s15 = scalar_lea.vmem %s284_s7, 32 }
  0x1e   :  { %387 = vmatpush3.msra.mxu1 %v68_v8  ;;  %353 = vmatprep.subr.mxu0 %v524_v1  ;;  %425 = vlog2.f32 %v242_v30  ;;  %235 = vst [vmem:[#allocation7] sm:$0x1] %v54_v49  ;;  %p456_p5 = scmp.ne.s32.totalorder %s284_s7, %s455_s14  ;;  %p460_p6 = scmp.lt.s32.totalorder %s284_s7, %s284_s7 }
  0x1f   :  { %388 = vmatprep.subr.mxu1 %v524_v1  ;;  %354 = vmatpush3.msra.mxu0 %v67_v10  ;;  %427 = vlog2.f32 %v245_v31  ;;  %v241_v42 = vsub.f32 0.0, %v237_v36  ;;  %p461_p7 = scmp.lt.s32.totalorder %s459_s15, %s455_s14 }
  0x20   :  { %389 = vmatpush3.msra.mxu1 %v67_v10  ;;  %355 = vmatprep.subr.mxu0 %v524_v1  ;;  %429 = vlog2.f32 %v250_v27 }
  0x21   :  { %390 = vmatprep.subr.mxu1 %v524_v1  ;;  %356 = vmatpush3.msra.mxu0 %v66_v11  ;;  %431 = vlog2.f32 %v255_v32  ;;  %p462_p8 = por %p461_p7, %p460_p6 }
  0x22   :  { %391 = vmatpush3.msra.mxu1 %v66_v11  ;;  %357 = vmatprep.subr.mxu0 %v524_v1 }
  0x23   :  { %392 = vmatprep.subr.mxu1 %v524_v1  ;;  %358 = vmatpush3.msra.mxu0 %v65_v12  ;;  %p463_p9 = pnand %p462_p8, %p456_p5 }
  0x24   :  { %393 = vmatpush3.msra.mxu1 %v65_v12  ;;  %359 = vmatprep.subr.mxu0 %v524_v1  ;;  %v424_v17 = vpop.eup %423 }
  0x25   :  { %394 = vmatprep.subr.mxu1 %v524_v1  ;;  %360 = vmatpush3.msra.mxu0 %v64_v13  ;;  %v73_v19 = vpack.c.bf16 %v424_v17, %v424_v17 }
  0x26   :  { %395 = vmatpush3.msra.mxu1 %v64_v13  ;;  %361 = vmatprep.subr.mxu0 %v524_v1 }
  0x27   :  { %396 = vmatprep.subr.mxu1 %v524_v1  ;;  %362 = vmatpush3.msra.mxu0 %v63_v14  ;;  %v74_v21 = vunpack.c.l.bf16 %v73_v19 }
  0x28   :  { %397 = vmatpush3.msra.mxu1 %v63_v14  ;;  %363 = vmatprep.subr.mxu0 %v524_v1 }
  0x29   :  { %398 = vmatprep.subr.mxu1 %v524_v1  ;;  %364 = vmatpush3.msra.mxu0 %v62_v15  ;;  %v75_v24 = vsub.f32 %v424_v17, %v74_v21 }
  0x2a   :  { %399 = vmatpush3.msra.mxu1 %v62_v15  ;;  %365 = vmatprep.subr.mxu0 %v524_v1 }
  0x2b   :  { %400 = vmatprep.subr.mxu1 %v524_v1  ;;  %366 = vmatpush3.msra.mxu0 %v61_v16  ;;  %v426_v33 = vpop.eup %425 }
  0x2c   :  { %401 = vmatpush3.msra.mxu1 %v61_v16  ;;  %367 = vmatprep.subr.mxu0 %v524_v1  ;;  %v428_v35 = vpop.eup %427  ;;  %v244_v37 = vmul.f32 0.6931472, %v426_v33 }
  0x2d   :  { %402 = vmatprep.subr.mxu1 %v524_v1  ;;  %368 = vmatpush3.msra.mxu0 %v60_v18  ;;  %v430_v39 = vpop.eup %429  ;;  %v247_v40 = vmul.f32 0.6931472, %v428_v35 }
  0x2e   :  { %403 = vmatpush3.msra.mxu1 %v60_v18  ;;  %369 = vmatprep.subr.mxu0 %v524_v1  ;;  %v432_v41 = vpop.eup %431  ;;  %v253_v43 = vmul.f32 0.6931472, %v430_v39 }
  0x2f   :  { %404 = vmatprep.subr.mxu1 %v524_v1  ;;  %370 = vmatpush3.msra.mxu0 %v59_v20  ;;  %v248_v44 = vadd.f32 %v247_v40, %v244_v37  ;;  %v257_v45 = vmul.f32 0.6931472, %v432_v41 }
  0x30   :  { %405 = vmatpush3.msra.mxu1 %v59_v20  ;;  %371 = vmatprep.subr.mxu0 %v524_v1  ;;  %v254_v46 = vmul.f32 %v253_v43, %v251_v38 }
  0x31   :  { %406 = vmatprep.subr.mxu1 %v524_v1  ;;  %372 = vmatpush3.msra.mxu0 %v58_v22  ;;  %v249_v47 = vmul.f32 %v248_v44, %v241_v42  ;;  %v258_v48 = vmul.f32 %v257_v45, %v237_v36 }
  0x32   :  { %407 = vmatpush3.msra.mxu1 %v58_v22  ;;  %373 = vmatprep.subr.mxu0 %v524_v1 }
  0x33   :  { %408 = vmatprep.subr.mxu1 %v524_v1  ;;  %374 = vmatpush3.msra.mxu0 %v57_v23  ;;  %v259_v50 = vsub.f32 %v254_v46, %v258_v48  ;;  %v261_v51 = vmul.f32 0.15, %v249_v47 }
  0x34   :  { %409 = vmatpush3.msra.mxu1 %v57_v23  ;;  %376 = vmatmul.mubr.f32.vlgmr.msra.gmra.mxu0 %v75_v24 }
  0x35   :  { %411 = vmatmul.mubr.f32.vlgmr.msra.gmra.mxu1 %v74_v21  ;;  %219 = vperm.xlu0 %422, %v216_v25  }
  0x36   :  { %466 = shalt.err (!%p463_p9)
}
  0x37   :  { %286 = dma.vmem_to_hbm [thread:$0]  %s284_s7, 16, %s674_s10, [#allocation8]   ;;  %v260_v52 = vmul.f32 0.85, %v259_v50  ;;  %v263_v53 = vld [vmem:[%s672_s8] sm:$0x1] }
  0x38   :  { %s528_s19 = smov [#allocation9]  }
  0x39   :  { %v262_v54 = vadd.f32 %v261_v51, %v260_v52  ;;  %s293_s20 = sshll.u32 %s528_s19, 4  ;;  %s294_s20 = int_to_ptr.vmem [resolvable:$true] %s293_s20 }
  0x3a   :  { %s475_s21 = scalar_lea.vmem %s294_s20, 16  ;;  %s479_s22 = scalar_lea.vmem %s294_s20, 32 }
  0x3b   :  { %v264_v55 = vmul.f32 %v263_v53, %v262_v54  ;;  %p476_p10 = scmp.ne.s32.totalorder %s294_s20, %s475_s21  ;;  %p480_p11 = scmp.lt.s32.totalorder %s294_s20, %s294_s20 }
  0x3c   :  { %p481_p12 = scmp.lt.s32.totalorder %s479_s22, %s475_s21 }
  0x3d   :  { %266 = vst [vmem:[#allocation9] sm:$0x1] %v264_v55 }
  0x3e   :  { %p482_p13 = por %p481_p12, %p480_p11 }
  0x40   :  { %p483_p0 = pnand %p482_p13, %p476_p10 }
  0x42   :  { %486 = shalt.err (!%p483_p0)
}
  0x43   :  { %296 = dma.vmem_to_hbm [thread:$0]  %s294_s20, 16, %s675_s11, [#allocation8]   ;;  %v222_v56 = vlaneseq }
  0x44   :  { %s529_s8 = smov [#allocation6]  }
  0x45   :  { %v223_v57 = vshrl.u32 %v222_v56, 7  ;;  %s273_s24 = sshll.u32 %s529_s8, 4  ;;  %s274_s24 = int_to_ptr.vmem [resolvable:$true] %s273_s24 }
  0x46   :  { %s495_s11 = scalar_lea.vmem %s274_s24, 16  ;;  %s499_s25 = scalar_lea.vmem %s274_s24, 32 }
  0x47   :  { %v224_v58 = vsub.s32 0, %v223_v57  ;;  %p496_p1 = scmp.ne.s32.totalorder %s274_s24, %s495_s11  ;;  %p500_p2 = scmp.lt.s32.totalorder %s274_s24, %s274_s24 }
  0x48   :  { %p501_p3 = scmp.lt.s32.totalorder %s499_s25, %s495_s11 }
  0x4a   :  { %p502_p4 = por %p501_p3, %p500_p2 }
  0x4c   :  { %p503_p5 = pnand %p502_p4, %p496_p1 }
  0xb0   :  { %v220_v59 = vpop.permute.xlu0 %219 }
  0xb1   :  { %v225_v60 = vrot.slane %v220_v59, %v224_v58 }
  0xf4   :  { %v142_v61 = vpop.f32.mrf.mxu0 }
  0xf5   :  { %v212_v62 = vpop.f32.mrf.mxu1 }
  0xf6   :  { %v213_v63 = vadd.f32 %v212_v62, %v142_v61  ;;  %v377_v0 = vpop.f32.mrf.mxu0 }
  0xf7   :  { %v412_v1 = vpop.f32.mrf.mxu1 }
  0xf8   :  { %v226_v2 = vadd.f32 %v225_v60, %v213_v63 }
  0xfa   :  { %v227_v3 = vadd.f32 1e-07, %v226_v2 }
  0xfc   :  { %433 = vlog2.f32 %v227_v3 }
 0x109   :  { %v434_v4 = vpop.eup %433 }
 0x10a   :  { %v229_v5 = vmul.f32 0.6931472, %v434_v4 }
 0x10c   :  { %v230_v6 = vsub.f32 %v607_v7, %v229_v5 }
 0x10e   :  { %v231_v8 = vmul.f32 %v230_v6, %v54_v49 }
 0x110   :  { %233 = vst [vmem:[#allocation6] sm:$0x1] %v231_v8 }
 0x111   :  { %506 = shalt.err (!%p503_p5)
}
 0x112   :  { %276 = dma.vmem_to_hbm [thread:$0]  %s274_s24, 16, %s673_s9, [#allocation5]  }
 0x113   :  { %517 = dma.done.wait [#allocation5], 16  }
 0x114   :  { %518 = vsyncadd [#allocation5], 4294967280 }
 0x115   :  { %519 = dma.done.wait [#allocation8], 32  }
 0x116   :  { %520 = vsyncadd [#allocation8], 4294967264 }
 0x117   :  { %306 = vsyncpa [#allocation4], 1 }
 0x118   :  { %307 = vsyncpa [#allocation5], 1 }
 0x119   :  { %308 = vsyncpa [#allocation8], 1 }

</bundles_post_ra>
